<compile_context>
chip_gen: v6e
topology: v6e:2x2x1
jax: 0.10.0
libtpu: 0.0.40
codegen_flags: <defaults>
</compile_context>

<pallas_src>
import jax
import jax.numpy as jnp
from jax.experimental import pallas as pl
from jax.experimental.pallas import tpu as pltpu


def _round_up(a: int, m: int) -> int:
    return int(pl.cdiv(a, m)) * m


def mlp_head_kernel(x_ref, w1_ref, b1_ref, g_ref, beta_ref, w2_ref, b2_ref, o_ref):
    # ---- fc1: (bm, D) @ (D, H), native-dtype operands, f32 accumulation ----
    h = jnp.dot(x_ref[...], w1_ref[...], preferred_element_type=jnp.float32)
    h = h + b1_ref[...].astype(jnp.float32)

    # ---- SquaredReLU (f32 epilogue) ----
    h = jnp.square(jnp.maximum(h, 0.0))

    # ---- LayerNorm over last dim (eps=1e-5, biased variance, like PyTorch) ----
    mu = jnp.mean(h, axis=-1, keepdims=True)
    var = jnp.mean(jnp.square(h - mu), axis=-1, keepdims=True)
    hn = (h - mu) * jax.lax.rsqrt(var + 1e-5)
    hn = hn * g_ref[...].astype(jnp.float32) + beta_ref[...].astype(jnp.float32)

    # ---- Dropout(p=0.0) is identity (inference) ----

    # ---- fc2: cast activation to weight dtype (bf16 MXU path when bf16), f32 acc ----
    out = jnp.dot(hn.astype(w2_ref.dtype), w2_ref[...],
                  preferred_element_type=jnp.float32)
    out = out + b2_ref[...].astype(jnp.float32)
    o_ref[...] = out.astype(o_ref.dtype)


# Conservative tile-shrink budget: leaves headroom under v7x's 64 MiB VMEM.
_VMEM_BUDGET_BYTES = 40 << 20


def _vmem_estimate(bm, D, H, C_pad, itemsize):
    # BlockSpec double-buffers every operand (including constant-index weight
    # blocks), hence the factor 2; f32 h/hn intermediates are (bm, H).
    weights = (D * H + 4 * H + H * C_pad + C_pad) * itemsize
    io = (bm * D + bm * C_pad) * itemsize
    interm = 2 * bm * H * 4
    return 2 * (weights + io) + interm


def mlp_head(x, w1, b1, gamma, beta, w2, b2, *, block_m=256):
    """x: (B, D); w1: (D, H); b1/gamma/beta: (H,) or (1, H); w2: (H, C); b2: (C,) or (1, C)."""
    B, D = x.shape
    H = w1.shape[1]
    C = w2.shape[1]
    out_dtype = x.dtype
    itemsize = jnp.dtype(x.dtype).itemsize

    b1 = b1.reshape(1, H)
    gamma = gamma.reshape(1, H)
    beta = beta.reshape(1, H)
    b2 = b2.reshape(1, C)

    # ---- lane-dense output: zero-pad C to a multiple of 128 ----
    C_pad = _round_up(C, 128)
    if C_pad != C:
        w2 = jnp.pad(w2, ((0, 0), (0, C_pad - C)))
        b2 = jnp.pad(b2, ((0, 0), (0, C_pad - C)))

    # ---- choose block_m: row-aligned (8 rows f32, 16 rows bf16), <= padded B,
    #      and shrunk until the VMEM estimate fits the budget ----
    row_align = 8 if itemsize >= 4 else 16
    bm = min(_round_up(max(block_m, row_align), row_align), _round_up(B, row_align))
    while bm > row_align and _vmem_estimate(bm, D, H, C_pad, itemsize) > _VMEM_BUDGET_BYTES:
        bm = max(row_align, ((bm // 2) // row_align) * row_align)
    # TODO(synk): for very large D*H / H*C weights (estimate still over budget at
    # bm == row_align) the hidden/output dims would need their own grid axes.

    vmem_limit = int(min(max(2 * _vmem_estimate(bm, D, H, C_pad, itemsize), 32 << 20),
                         56 << 20))

    # ---- pad batch to a multiple of bm (pad rows are zeros; LN eps keeps them finite) ----
    B_pad = _round_up(B, bm)
    if B_pad != B:
        x = jnp.pad(x, ((0, B_pad - B), (0, 0)))

    grid = (B_pad // bm,)
    out = pl.pallas_call(
        mlp_head_kernel,
        out_shape=jax.ShapeDtypeStruct((B_pad, C_pad), out_dtype),
        grid_spec=pltpu.PrefetchScalarGridSpec(
            num_scalar_prefetch=0,
            grid=grid,
            in_specs=[
                pl.BlockSpec((bm, D), lambda i: (i, 0)),        # x tile (streamed)
                pl.BlockSpec((D, H), lambda i: (0, 0)),          # w1 (resident)
                pl.BlockSpec((1, H), lambda i: (0, 0)),          # b1
                pl.BlockSpec((1, H), lambda i: (0, 0)),          # gamma
                pl.BlockSpec((1, H), lambda i: (0, 0)),          # beta
                pl.BlockSpec((H, C_pad), lambda i: (0, 0)),      # w2 (resident, padded)
                pl.BlockSpec((1, C_pad), lambda i: (0, 0)),      # b2 (padded)
            ],
            out_specs=pl.BlockSpec((bm, C_pad), lambda i: (i, 0)),
        ),
        compiler_params=pltpu.CompilerParams(
            dimension_semantics=("parallel",),
            vmem_limit_bytes=vmem_limit,
        ),
    )(x, w1, b1, gamma, beta, w2, b2)

    return out[:B, :C]


def mlp_head_ref(x, w1, b1, gamma, beta, w2, b2):
    """Pure-JAX reference matching the PyTorch forward pass (f32)."""
    h = x.astype(jnp.float32) @ w1.astype(jnp.float32) + b1.astype(jnp.float32)
    h = jnp.square(jnp.maximum(h, 0.0))
    mu = jnp.mean(h, axis=-1, keepdims=True)
    var = jnp.mean(jnp.square(h - mu), axis=-1, keepdims=True)
    hn = (h - mu) * jax.lax.rsqrt(var + 1e-5)
    hn = hn * gamma.astype(jnp.float32) + beta.astype(jnp.float32)
    return hn @ w2.astype(jnp.float32) + b2.astype(jnp.float32)


if __name__ == "__main__":
    # Module-consistent small shapes: dim=32, mlp_ratio=4 -> hidden=128, classes=16.
    D, MLP_RATIO, C = 32, 4, 16
    H = MLP_RATIO * D

    key = jax.random.PRNGKey(0)
    kx, kw1, kb1, kw2, kb2 = jax.random.split(key, 5)

    # Deterministic synthetic parameters (nn.Linear-style scale).
    w1 = jax.random.normal(kw1, (D, H), dtype=jnp.float32) * (1.0 / jnp.sqrt(D))
    b1 = jax.random.normal(kb1, (H,), dtype=jnp.float32) * 0.01
    gamma = jnp.ones((H,), dtype=jnp.float32)    # LayerNorm weight init
    beta = jnp.zeros((H,), dtype=jnp.float32)    # LayerNorm bias init
    w2 = jax.random.normal(kw2, (H, C), dtype=jnp.float32) * (1.0 / jnp.sqrt(H))
    b2 = jax.random.normal(kb2, (C,), dtype=jnp.float32) * 0.01

    # f32 configs: (B=8, big block_m clamps to batch) and (B=12, block_m=8 ->
    # multi-step grid + ragged-batch padding path).
    for batch, blk in ((8, 256), (12, 8)):
        x = jax.random.normal(jax.random.fold_in(kx, batch), (batch, D),
                              dtype=jnp.float32)
        out = mlp_head(x, w1, b1, gamma, beta, w2, b2, block_m=blk)
        out = jax.block_until_ready(out)
        ref = mlp_head_ref(x, w1, b1, gamma, beta, w2, b2)
        assert out.shape == (batch, C)
        assert jnp.allclose(out, ref, atol=1e-4, rtol=1e-4), f"mismatch (B={batch})"

    # bf16 config: exercises the native-dtype MXU path (f32 accumulation).
    xb = jax.random.normal(jax.random.fold_in(kx, 99), (16, D),
                           dtype=jnp.float32).astype(jnp.bfloat16)
    w1b, b1b = w1.astype(jnp.bfloat16), b1.astype(jnp.bfloat16)
    gb, bb = gamma.astype(jnp.bfloat16), beta.astype(jnp.bfloat16)
    w2b, b2b = w2.astype(jnp.bfloat16), b2.astype(jnp.bfloat16)
    outb = mlp_head(xb, w1b, b1b, gb, bb, w2b, b2b, block_m=256)
    outb = jax.block_until_ready(outb)
    refb = mlp_head_ref(xb, w1b, b1b, gb, bb, w2b, b2b)
    assert outb.shape == (16, C)
    assert jnp.allclose(outb.astype(jnp.float32), refb, atol=0.25, rtol=0.25), "bf16 mismatch"

    print("KERNEL_OK")
</pallas_src>

<mosaic_0001>
module attributes {stable_mosaic.version = 11 : i64} {
  func.func @mlp_head_kernel(%arg0: i32, %arg1: memref<8x32xf32, #tpu.memory_space<vmem>>, %arg2: memref<32x128xf32, #tpu.memory_space<vmem>>, %arg3: memref<1x128xf32, #tpu.memory_space<vmem>>, %arg4: memref<1x128xf32, #tpu.memory_space<vmem>>, %arg5: memref<1x128xf32, #tpu.memory_space<vmem>>, %arg6: memref<128x128xf32, #tpu.memory_space<vmem>>, %arg7: memref<1x128xf32, #tpu.memory_space<vmem>>, %arg8: memref<8x128xf32, #tpu.memory_space<vmem>>) attributes {dimension_semantics = [#tpu.dimension_semantics<parallel>], iteration_bounds = array<i64: 1>, scalar_prefetch = 0 : i64, scratch_operands = 0 : i64, tpu.core_type = #tpu.core_type<tc>, window_params = [{transform_indices = @transform_0, window_bounds = array<i64: 8, 32>}, {pipeline_mode = #tpu.pipeline_mode<synchronous>, transform_indices = @transform_1, window_bounds = array<i64: 32, 128>}, {pipeline_mode = #tpu.pipeline_mode<synchronous>, transform_indices = @transform_2, window_bounds = array<i64: 1, 128>}, {pipeline_mode = #tpu.pipeline_mode<synchronous>, transform_indices = @transform_3, window_bounds = array<i64: 1, 128>}, {pipeline_mode = #tpu.pipeline_mode<synchronous>, transform_indices = @transform_4, window_bounds = array<i64: 1, 128>}, {pipeline_mode = #tpu.pipeline_mode<synchronous>, transform_indices = @transform_5, window_bounds = array<i64: 128, 128>}, {pipeline_mode = #tpu.pipeline_mode<synchronous>, transform_indices = @transform_6, window_bounds = array<i64: 1, 128>}, {transform_indices = @transform_7, window_bounds = array<i64: 8, 128>}]} {
    %c0 = arith.constant 0 : index
    %c0_0 = arith.constant 0 : index
    %0 = vector.load %arg1[%c0, %c0_0] : memref<8x32xf32, #tpu.memory_space<vmem>>, vector<8x32xf32>
    %c0_1 = arith.constant 0 : index
    %c0_2 = arith.constant 0 : index
    %1 = vector.load %arg2[%c0_1, %c0_2] : memref<32x128xf32, #tpu.memory_space<vmem>>, vector<32x128xf32>
    %cst = arith.constant dense<0.000000e+00> : vector<8x128xf32>
    %2 = tpu.matmul %0, %1, %cst {dimension_numbers = #tpu.dot_dimension_numbers<[1], [0], [0], [1], [0, 0, 1, 1], [], []>} : vector<8x32xf32>, vector<32x128xf32>, vector<8x128xf32> -> vector<8x128xf32>
    %c0_3 = arith.constant 0 : index
    %c0_4 = arith.constant 0 : index
    %3 = vector.load %arg3[%c0_3, %c0_4] : memref<1x128xf32, #tpu.memory_space<vmem>>, vector<1x128xf32>
    %4 = vector.broadcast %3 : vector<1x128xf32> to vector<8x128xf32>
    %5 = arith.addf %2, %4 : vector<8x128xf32>
    %cst_5 = arith.constant 0.000000e+00 : f32
    %6 = vector.broadcast %cst_5 : f32 to vector<8x128xf32>
    %7 = arith.maximumf %5, %6 : vector<8x128xf32>
    %8 = arith.mulf %7, %7 : vector<8x128xf32>
    %cst_6 = arith.constant dense<0.000000e+00> : vector<8xf32>
    %9 = vector.multi_reduction <add>, %8, %cst_6 [1] : vector<8x128xf32> to vector<8xf32>
    %10 = vector.shape_cast %9 : vector<8xf32> to vector<8x1xf32>
    %cst_7 = arith.constant 1.280000e+02 : f32
    %11 = vector.broadcast %cst_7 : f32 to vector<8x1xf32>
    %12 = arith.divf %10, %11 : vector<8x1xf32>
    %13 = vector.broadcast %12 : vector<8x1xf32> to vector<8x128xf32>
    %14 = arith.subf %8, %13 : vector<8x128xf32>
    %15 = arith.mulf %14, %14 : vector<8x128xf32>
    %cst_8 = arith.constant dense<0.000000e+00> : vector<8xf32>
    %16 = vector.multi_reduction <add>, %15, %cst_8 [1] : vector<8x128xf32> to vector<8xf32>
    %17 = vector.shape_cast %16 : vector<8xf32> to vector<8x1xf32>
    %cst_9 = arith.constant 1.280000e+02 : f32
    %18 = vector.broadcast %cst_9 : f32 to vector<8x1xf32>
    %19 = arith.divf %17, %18 : vector<8x1xf32>
    %20 = vector.broadcast %12 : vector<8x1xf32> to vector<8x128xf32>
    %21 = arith.subf %8, %20 : vector<8x128xf32>
    %cst_10 = arith.constant 9.99999974E-6 : f32
    %22 = vector.broadcast %cst_10 : f32 to vector<8x1xf32>
    %23 = arith.addf %19, %22 : vector<8x1xf32>
    %24 = math.rsqrt %23 : vector<8x1xf32>
    %25 = vector.broadcast %24 : vector<8x1xf32> to vector<8x128xf32>
    %26 = arith.mulf %21, %25 : vector<8x128xf32>
    %c0_11 = arith.constant 0 : index
    %c0_12 = arith.constant 0 : index
    %27 = vector.load %arg4[%c0_11, %c0_12] : memref<1x128xf32, #tpu.memory_space<vmem>>, vector<1x128xf32>
    %28 = vector.broadcast %27 : vector<1x128xf32> to vector<8x128xf32>
    %29 = arith.mulf %26, %28 : vector<8x128xf32>
    %c0_13 = arith.constant 0 : index
    %c0_14 = arith.constant 0 : index
    %30 = vector.load %arg5[%c0_13, %c0_14] : memref<1x128xf32, #tpu.memory_space<vmem>>, vector<1x128xf32>
    %31 = vector.broadcast %30 : vector<1x128xf32> to vector<8x128xf32>
    %32 = arith.addf %29, %31 : vector<8x128xf32>
    %c0_15 = arith.constant 0 : index
    %c0_16 = arith.constant 0 : index
    %33 = vector.load %arg6[%c0_15, %c0_16] : memref<128x128xf32, #tpu.memory_space<vmem>>, vector<128x128xf32>
    %cst_17 = arith.constant dense<0.000000e+00> : vector<8x128xf32>
    %34 = tpu.matmul %32, %33, %cst_17 {dimension_numbers = #tpu.dot_dimension_numbers<[1], [0], [0], [1], [0, 0, 1, 1], [], []>} : vector<8x128xf32>, vector<128x128xf32>, vector<8x128xf32> -> vector<8x128xf32>
    %c0_18 = arith.constant 0 : index
    %c0_19 = arith.constant 0 : index
    %35 = vector.load %arg7[%c0_18, %c0_19] : memref<1x128xf32, #tpu.memory_space<vmem>>, vector<1x128xf32>
    %36 = vector.broadcast %35 : vector<1x128xf32> to vector<8x128xf32>
    %37 = arith.addf %34, %36 : vector<8x128xf32>
    %c0_20 = arith.constant 0 : index
    %c0_21 = arith.constant 0 : index
    %38 = vector.load %arg8[%c0_20, %c0_21] : memref<8x128xf32, #tpu.memory_space<vmem>>, vector<8x128xf32>
    tpu.vector_store %arg8[%c0_20, %c0_21], %37 {strides = array<i32>} : memref<8x128xf32, #tpu.memory_space<vmem>>, vector<8x128xf32>,
    return
  }
  func.func @transform_0(%arg0: i32) -> (i32, i32) {
    %c0_i32 = arith.constant 0 : i32
    %c0_i32_0 = arith.constant 0 : i32
    return %arg0, %c0_i32 : i32, i32
  }
  func.func @transform_1(%arg0: i32) -> (i32, i32) {
    %c0_i32 = arith.constant 0 : i32
    %c0_i32_0 = arith.constant 0 : i32
    %c0_i32_1 = arith.constant 0 : i32
    return %c0_i32, %c0_i32_0 : i32, i32
  }
  func.func @transform_2(%arg0: i32) -> (i32, i32) {
    %c0_i32 = arith.constant 0 : i32
    %c0_i32_0 = arith.constant 0 : i32
    %c0_i32_1 = arith.constant 0 : i32
    return %c0_i32, %c0_i32_0 : i32, i32
  }
  func.func @transform_3(%arg0: i32) -> (i32, i32) {
    %c0_i32 = arith.constant 0 : i32
    %c0_i32_0 = arith.constant 0 : i32
    %c0_i32_1 = arith.constant 0 : i32
    return %c0_i32, %c0_i32_0 : i32, i32
  }
  func.func @transform_4(%arg0: i32) -> (i32, i32) {
    %c0_i32 = arith.constant 0 : i32
    %c0_i32_0 = arith.constant 0 : i32
    %c0_i32_1 = arith.constant 0 : i32
    return %c0_i32, %c0_i32_0 : i32, i32
  }
  func.func @transform_5(%arg0: i32) -> (i32, i32) {
    %c0_i32 = arith.constant 0 : i32
    %c0_i32_0 = arith.constant 0 : i32
    %c0_i32_1 = arith.constant 0 : i32
    return %c0_i32, %c0_i32_0 : i32, i32
  }
  func.func @transform_6(%arg0: i32) -> (i32, i32) {
    %c0_i32 = arith.constant 0 : i32
    %c0_i32_0 = arith.constant 0 : i32
    %c0_i32_1 = arith.constant 0 : i32
    return %c0_i32, %c0_i32_0 : i32, i32
  }
  func.func @transform_7(%arg0: i32) -> (i32, i32) {
    %c0_i32 = arith.constant 0 : i32
    %c0_i32_0 = arith.constant 0 : i32
    return %arg0, %c0_i32 : i32, i32
  }
}

</mosaic_0001>

<bundles_post_ra>
// kernel: tpu_custom_call.1
= control target key start
LH: loop header
LB: loop body
LE: loop exit
PB: predicated region body
PF: predicated region fallthrough
CT: control target
= control target key end

     0   :  { %12 = vsyncpa [#allocation3], 0  ;;  %s555_s0 = inlined_call_operand.hbm [shape: f32[8,32], index: 0, kind: input, shape index: {}]   ;;  %s556_s1 = inlined_call_operand.hbm [shape: f32[32,128], index: 1, kind: input, shape index: {}]   ;;  %s557_s2 = inlined_call_operand.vmem [shape: f32[1,128], index: 2, kind: input, shape index: {}]   ;;  %s558_s3 = inlined_call_operand.vmem [shape: f32[1,128], index: 3, kind: input, shape index: {}]   ;;  %s559_s4 = inlined_call_operand.vmem [shape: f32[1,128], index: 4, kind: input, shape index: {}]   ;;  %s560_s5 = inlined_call_operand.hbm [shape: f32[128,128], index: 5, kind: input, shape index: {}]   ;;  %s561_s6 = inlined_call_operand.vmem [shape: f32[1,128], index: 6, kind: input, shape index: {}]   ;;  %s562_s7 = inlined_call_operand.hbm [shape: f32[8,128], index: 7, kind: output, shape index: {}]  }
   0x1   :  { %13 = vsyncpa [#allocation6], 0 }
   0x2   :  { %14 = vsyncpa [#allocation4], 0  ;;  %s461_s24 = smov [#allocation5]  }
   0x3   :  { %s30_s25 = sshll.u32 %s461_s24, 4  ;;  %s31_s25 = int_to_ptr.vmem [resolvable:$true] %s30_s25 }
   0x4   :  { %s383_s26 = scalar_lea.vmem %s31_s25, 512  ;;  %p388_p1 = scmp.lt.s32.totalorder %s31_s25, %s31_s25 }
   0x5   :  { %p384_p0 = scmp.ne.s32.totalorder %s31_s25, %s383_s26  ;;  %p389_p2 = scmp.lt.s32.totalorder %s383_s26, %s383_s26 }
   0x7   :  { %p390_p3 = por %p389_p2, %p388_p1 }
   0x9   :  { %p391_p4 = pnand %p390_p3, %p384_p0 }
   0xb   :  { %394 = shalt.err (!%p391_p4)
}
   0xc   :  { %s462_s27 = smov 128   ;;  %s463_s28 = smov 8  }
   0xd   :  { %36 = dma.hbm_to_vmem [thread:$0]  %s556_s1, 512, %s31_s25, [#allocation6], %s462_s27, %s462_s27, %s463_s28  }
   0xe   :  { %s464_s8 = smov [#allocation2]   ;;  %s465_s10 = smov [#allocation7]  }
   0xf   :  { %s21_s9 = sshll.u32 %s464_s8, 4  ;;  %s48_s11 = sshll.u32 %s465_s10, 4  ;;  %s22_s9 = int_to_ptr.vmem [resolvable:$true] %s21_s9  ;;  %s49_s11 = int_to_ptr.vmem [resolvable:$true] %s48_s11 }
  0x10   :  { %s403_s12 = scalar_lea.vmem %s22_s9, 128  ;;  %p408_p6 = scmp.lt.s32.totalorder %s22_s9, %s22_s9 }
  0x11   :  { %p404_p5 = scmp.ne.s32.totalorder %s22_s9, %s403_s12  ;;  %p409_p7 = scmp.lt.s32.totalorder %s403_s12, %s403_s12 }
  0x13   :  { %p410_p8 = por %p409_p7, %p408_p6 }
  0x15   :  { %p411_p9 = pnand %p410_p8, %p404_p5 }
  0x17   :  { %414 = shalt.err (!%p411_p9)
}
  0x18   :  { %24 = dma.hbm_to_vmem [thread:$0]  %s555_s0, 128, %s22_s9, [#allocation3]  }
  0x19   :  { %s423_s15 = scalar_lea.vmem %s49_s11, 2048  ;;  %p428_p11 = scmp.lt.s32.totalorder %s49_s11, %s49_s11 }
  0x1a   :  { %p424_p10 = scmp.ne.s32.totalorder %s49_s11, %s423_s15  ;;  %p429_p12 = scmp.lt.s32.totalorder %s423_s15, %s423_s15 }
  0x1c   :  { %p430_p13 = por %p429_p12, %p428_p11 }
  0x1e   :  { %p431_p0 = pnand %p430_p13, %p424_p10 }
  0x20   :  { %434 = shalt.err (!%p431_p0)
}
  0x21   :  { %54 = dma.hbm_to_vmem [thread:$0]  %s560_s5, 2048, %s49_s11, [#allocation6], %s462_s27, %s462_s27, %s463_s28  }
  0x22   :  { %455 = dma.done.wait [#allocation3], 128  }
  0x23   :  { %456 = vsyncadd [#allocation3], 4294967168 }
  0x24   :  { %457 = dma.done.wait [#allocation6], 2560  }
  0x25   :  { %458 = vsyncadd [#allocation6], 4294964736  ;;  %v466_v0 = vmov 0.0   ;;  %vm467_vm0 = vmmov 0   ;;  %v70_v1 = vld [vmem:[#allocation5 + $0x18] sm:$0xff]  ;;  %v69_v2 = vld [vmem:[#allocation5 + $0x10] sm:$0xff] }
  0x26   :  { %319 = vmatprep.subr.mxu0 %v466_v0  ;;  %327 = vmatprep.mubr.msk.f32.mxu0 %vm467_vm0, %v466_v0  ;;  %v68_v3 = vld [vmem:[#allocation5 + $0x8] sm:$0xff]  ;;  %v67_v4 = vld [vmem:[#allocation5] sm:$0xff]  ;;  %v66_v5 = vld [vmem:[#allocation2] sm:$0xff]  ;;  %vm78_vm1 = vcmask 261120   ;;  %s468_s22 = smov [#allocation8]  }
  0x27   :  { %330 = vmatprep.subr.mxu1 %v466_v0  ;;  %362 = vmatprep.mubr.msk.f32.mxu1 %vm467_vm0, %v466_v0  ;;  %v292_v6 = vld [vmem:[%s557_s2] ss:$0 sm:$0xff]  ;;  %v196_v13 = vld [vmem:[#allocation7 + $0x70] sm:$0xff]  ;;  %v195_v14 = vld [vmem:[#allocation7 + $0x68] sm:$0xff]  ;;  %s282_s23 = sshll.u32 %s468_s22, 4  ;;  %s283_s23 = int_to_ptr.vmem [resolvable:$true] %s282_s23 }
  0x28   :  { %320 = vmatpush3.msra.mxu0 %v70_v1  ;;  %v197_v12 = vld [vmem:[#allocation7 + $0x78] sm:$0xff]  ;;  %v194_v15 = vld [vmem:[#allocation7 + $0x60] sm:$0xff]  ;;  %v192_v21 = vld [vmem:[#allocation7 + $0x50] sm:$0xff]  ;;  %p440_p2 = scmp.lt.s32.totalorder %s283_s23, %s283_s23 }
  0x29   :  { %321 = vmatprep.subr.mxu0 %v466_v0  ;;  %331 = vmatpush3.msra.mxu1 %v197_v12  ;;  %v193_v20 = vld [vmem:[#allocation7 + $0x58] sm:$0xff]  ;;  %v191_v22 = vld [vmem:[#allocation7 + $0x48] sm:$0xff]  ;;  %v190_v23 = vld [vmem:[#allocation7 + $0x40] sm:$0xff] }
  0x2a   :  { %322 = vmatpush3.msra.mxu0 %v69_v2  ;;  %332 = vmatprep.subr.mxu1 %v466_v0  ;;  %v189_v24 = vld [vmem:[#allocation7 + $0x38] sm:$0xff]  ;;  %v188_v25 = vld [vmem:[#allocation7 + $0x30] sm:$0xff]  ;;  %v187_v26 = vld [vmem:[#allocation7 + $0x28] sm:$0xff] }
  0x2b   :  { %323 = vmatprep.subr.mxu0 %v466_v0  ;;  %333 = vmatpush3.msra.mxu1 %v196_v13  ;;  %v186_v27 = vld [vmem:[#allocation7 + $0x20] sm:$0xff]  ;;  %v185_v28 = vld [vmem:[#allocation7 + $0x18] sm:$0xff]  ;;  %v184_v29 = vld [vmem:[#allocation7 + $0x10] sm:$0xff] }
  0x2c   :  { %324 = vmatpush3.msra.mxu0 %v68_v3  ;;  %334 = vmatprep.subr.mxu1 %v466_v0  ;;  %v183_v30 = vld [vmem:[#allocation7 + $0x8] sm:$0xff]  ;;  %v182_v31 = vld [vmem:[#allocation7] sm:$0xff]  ;;  %v294_v36 = vld [vmem:[%s558_s3] ss:$0 sm:$0xff]  ;;  %s435_s3 = scalar_lea.vmem %s283_s23, 128 }
  0x2d   :  { %325 = vmatprep.subr.mxu0 %v466_v0  ;;  %335 = vmatpush3.msra.mxu1 %v195_v14  ;;  %v295_v38 = vld [vmem:[%s559_s4] ss:$0 sm:$0xff]  ;;  %p436_p1 = scmp.ne.s32.totalorder %s283_s23, %s435_s3  ;;  %p441_p3 = scmp.lt.s32.totalorder %s435_s3, %s435_s3 }
  0x2e   :  { %326 = vmatpush3.msra.mxu0 %v67_v4  ;;  %336 = vmatprep.subr.mxu1 %v466_v0  ;;  %v296_v41 = vld [vmem:[%s561_s6] ss:$0 sm:$0xff] }
  0x2f   :  { %328 = vmatmul.mubr.msk.f32.vlgmr.msra.gmra.mxu0 %vm78_vm1, %v66_v5  ;;  %337 = vmatpush3.msra.mxu1 %v194_v15  ;;  %p442_p4 = por %p441_p3, %p440_p2 }
  0x30   :  { %338 = vmatprep.subr.mxu1 %v466_v0 }
  0x31   :  { %339 = vmatpush3.msra.mxu1 %v193_v20  ;;  %p443_p5 = pnand %p442_p4, %p436_p1 }
  0x32   :  { %340 = vmatprep.subr.mxu1 %v466_v0 }
  0x33   :  { %341 = vmatpush3.msra.mxu1 %v192_v21 }
  0x34   :  { %342 = vmatprep.subr.mxu1 %v466_v0 }
  0x35   :  { %343 = vmatpush3.msra.mxu1 %v191_v22 }
  0x36   :  { %344 = vmatprep.subr.mxu1 %v466_v0 }
  0x37   :  { %345 = vmatpush3.msra.mxu1 %v190_v23 }
  0x38   :  { %346 = vmatprep.subr.mxu1 %v466_v0 }
  0x39   :  { %347 = vmatpush3.msra.mxu1 %v189_v24 }
  0x3a   :  { %348 = vmatprep.subr.mxu1 %v466_v0 }
  0x3b   :  { %349 = vmatpush3.msra.mxu1 %v188_v25 }
  0x3c   :  { %350 = vmatprep.subr.mxu1 %v466_v0 }
  0x3d   :  { %351 = vmatpush3.msra.mxu1 %v187_v26 }
  0x3e   :  { %352 = vmatprep.subr.mxu1 %v466_v0 }
  0x3f   :  { %353 = vmatpush3.msra.mxu1 %v186_v27 }
  0x40   :  { %354 = vmatprep.subr.mxu1 %v466_v0 }
  0x41   :  { %355 = vmatpush3.msra.mxu1 %v185_v28 }
  0x42   :  { %356 = vmatprep.subr.mxu1 %v466_v0 }
  0x43   :  { %357 = vmatpush3.msra.mxu1 %v184_v29 }
  0x44   :  { %358 = vmatprep.subr.mxu1 %v466_v0 }
  0x45   :  { %359 = vmatpush3.msra.mxu1 %v183_v30 }
  0x46   :  { %360 = vmatprep.subr.mxu1 %v466_v0 }
  0x47   :  { %361 = vmatpush3.msra.mxu1 %v182_v31 }
  0xef   :  { %v148_v7 = vpop.f32.mrf.mxu0 }
  0xf0   :  { %v149_v8 = vadd.f32 %v292_v6, %v148_v7 }
  0xf1   :  { %v329_v9 = vpop.f32.mrf.mxu0 }
  0xf2   :  { %v152_v10 = vmax.f32 %v149_v8, 0.0 }
  0xf4   :  { %v153_v11 = vmul.f32 %v152_v10, %v152_v10 }
  0xf6   :  { %154 = vadd.xlane.f32.xlu0 %v153_v11 }
 0x17f   :  { %v155_v16 = vpop.xlane.xlu0 %154 }
 0x180   :  { %v157_v17 = vmul.f32 0.0078125, %v155_v16 }
 0x182   :  { %v158_v18 = vsub.f32 %v153_v11, %v157_v17 }
 0x184   :  { %v159_v19 = vmul.f32 %v158_v18, %v158_v18 }
 0x186   :  { %160 = vadd.xlane.f32.xlu0 %v159_v19 }
 0x20f   :  { %v161_v32 = vpop.xlane.xlu0 %160 }
 0x210   :  { %v162_v33 = vmul.f32 0.0078125, %v161_v32 }
 0x212   :  { %v163_v34 = vadd.f32 1e-05, %v162_v33 }
 0x214   :  { %373 = vrsqrt.f32 %v163_v34 }
 0x221   :  { %v374_v35 = vpop.eup %373 }
 0x222   :  { %v165_v37 = vmul.f32 %v374_v35, %v158_v18 }
 0x224   :  { %v173_v39 = vmul.f32 %v294_v36, %v165_v37 }
 0x226   :  { %v181_v40 = vadd.f32 %v295_v38, %v173_v39 }
 0x228   :  { %363 = vmatmul.mubr.f32.vlgmr.msra.gmra.mxu1 %v181_v40 }
 0x2e8   :  { %v271_v42 = vpop.f32.mrf.mxu1 }
 0x2e9   :  { %v272_v43 = vadd.f32 %v296_v41, %v271_v42 }
 0x2ea   :  { %v364_v44 = vpop.f32.mrf.mxu1 }
 0x2eb   :  { %275 = vst [vmem:[#allocation8] sm:$0xff] %v272_v43 }
 0x2ec   :  { %446 = shalt.err (!%p443_p5)
}
 0x2ed   :  { %285 = dma.vmem_to_hbm [thread:$0]  %s283_s23, 128, %s562_s7, [#allocation4]  }
 0x2ee   :  { %459 = dma.done.wait [#allocation4], 128  }
 0x2ef   :  { %460 = vsyncadd [#allocation4], 4294967168 }
 0x2f0   :  { %289 = vsyncpa [#allocation3], 1 }
 0x2f1   :  { %290 = vsyncpa [#allocation6], 1 }
 0x2f2   :  { %291 = vsyncpa [#allocation4], 1 }

</bundles_post_ra>
